<compile_context>
chip_gen: v7x
topology: tpu7x:2x2x1
jax: 0.10.0
libtpu: 0.0.40
codegen_flags: <defaults>
</compile_context>

<pallas_src>
import collections
import functools

import jax
import jax.numpy as jnp
from jax.experimental import pallas as pl
from jax.experimental.pallas import tpu as pltpu


def _round_up(x, m):
    return ((x + m - 1) // m) * m


# ----------------------------------------------------------------------------
# Hardware detection & tiling plan
# ----------------------------------------------------------------------------
_Plan = collections.namedtuple(
    "_Plan", ["tn", "n_p", "n_tiles", "d_in_p", "d_out_p", "vmem_limit", "agg_bufs"])


def _detect_hw():
    kind = ""
    try:
        kind = jax.devices()[0].device_kind.lower()
    except Exception:
        pass
    is_v7 = ("v7" in kind) or ("7x" in kind)
    is_v5 = "v5" in kind
    cap = None
    try:
        info = pltpu.get_tpu_info()
        cap = int(getattr(info, "vmem_capacity_bytes", 0)) or None
    except Exception:
        cap = None
    if cap is None:
        cap = (64 << 20) if is_v7 else (128 << 20)
    if is_v7:
        # the query may report the per-chip (2 TC) aggregate; VMEM is 64 MiB/TC
        cap = min(cap, 64 << 20)
    return cap, is_v5


def _choose_tile_n(n, d_in_p, d_out_p, vmem_cap, agg_bufs):
    """Largest 128-aligned node tile whose buffers fit the per-core VMEM budget."""
    budget = int(vmem_cap * 0.60)          # headroom for Mosaic internal scratch
    n128 = _round_up(max(n, 1), 128)
    cap = 1024 if vmem_cap >= (100 << 20) else 512   # v6e headroom, v5e/v7x cap
    cap = min(cap, n128)
    for cand in range(cap, 127, -128):
        n_p = _round_up(n128, cand)
        need = (
            2 * n_p * d_in_p * 2           # xfull (bf16), conservatively x2 buffers
            + 2 * d_in_p * d_out_p * 2     # root (bf16)
            + 2 * d_out_p * 4              # bias (f32)
            + agg_bufs * cand * n_p * 2    # streamed agg tiles (bf16)
            + 2 * d_in_p * d_out_p * 2     # streamed W[r] (bf16), double buffer
            + 2 * cand * d_out_p * 4       # output tile (f32), double buffer
        )
        if need <= budget:
            return cand
    return 128


def make_plan(num_nodes, d_in, d_out):
    vmem_cap, is_v5 = _detect_hw()

    def lane(d):  # 256-align large dims on 256-wide MXUs (v6e/v7x); 128 otherwise
        return _round_up(d, 256 if (not is_v5 and d > 128) else 128)

    d_in_p, d_out_p = lane(d_in), lane(d_out)
    agg_bufs = 3 if vmem_cap >= (100 << 20) else 2
    tn = _choose_tile_n(num_nodes, d_in_p, d_out_p, vmem_cap, agg_bufs)
    n_p = _round_up(_round_up(num_nodes, 128), tn)
    vmem_limit = int(min(vmem_cap * 3 // 4, 112 << 20))
    return _Plan(tn, n_p, n_p // tn, d_in_p, d_out_p, vmem_limit, agg_bufs)


# ----------------------------------------------------------------------------
# Glue: graph -> padded bf16 aggregation tensor + O(E) flags / DMA remap tables
# ----------------------------------------------------------------------------
def build_graph_operands(edge_index, edge_type, edge_norm, num_nodes, num_rel, plan):
    src, dst = edge_index[0], edge_index[1]
    # PyG MessagePassing(aggr='mean') divides by the TOTAL in-degree.
    deg = jnp.zeros((num_nodes,), jnp.float32).at[dst].add(1.0)
    coef = (edge_norm / jnp.maximum(deg, 1.0)[dst]).astype(jnp.bfloat16)

    # scatter directly into the padded bf16 buffer (no f32 build + pad + cast)
    agg_p = jnp.zeros((num_rel, plan.n_p, plan.n_p), jnp.bfloat16)
    agg_p = agg_p.at[edge_type, dst, src].add(coef)

    # O(E) per-(node-tile, relation) nonzero flags, traversal order s = i*R + r
    tile_of_dst = dst // plan.tn
    tile_rel = jnp.zeros((plan.n_tiles, num_rel), jnp.int32)
    tile_rel = tile_rel.at[tile_of_dst, edge_type].add(1)
    flags = (tile_rel > 0).reshape(-1).astype(jnp.int32)

    # DMA-elision remap: zero-flag steps re-use the last nonzero step's block
    # index so Pallas skips the agg refetch (block index unchanged).
    n_steps = plan.n_tiles * num_rel
    step = jnp.arange(n_steps, dtype=jnp.int32)
    last_nz = jax.lax.cummax(jnp.where(flags > 0, step, -1), axis=0)
    last_nz = jnp.maximum(last_nz, 0)
    remap_r = (last_nz % num_rel).astype(jnp.int32)
    remap_i = (last_nz // num_rel).astype(jnp.int32)
    return agg_p, flags, remap_r, remap_i


# ----------------------------------------------------------------------------
# Pallas kernel: one RGCNConv layer (mean aggregation, precombined W[r])
# ----------------------------------------------------------------------------
def _rgcn_kernel(flags_ref, rmr_ref, rmi_ref, xfull_ref, a_ref, w_ref, root_ref,
                 bias_ref, out_ref, *, apply_relu, tile_n):
    del rmr_ref, rmi_ref                 # only used by the agg index_map
    i = pl.program_id(0)                 # node-tile axis (parallel)
    r = pl.program_id(1)                 # relation axis (sequential reduction)
    nr = pl.num_programs(1)

    # Output tile is resident across r -> init with root/bias term at r == 0.
    @pl.when(r == 0)
    def _init():
        row0 = pl.multiple_of(i * tile_n, 128)
        xtile = xfull_ref[pl.ds(row0, tile_n), :]            # bf16 node tile
        out_ref[...] = (
            jnp.dot(xtile, root_ref[...], preferred_element_type=jnp.float32)
            + bias_ref[...])

    # Skip compute on all-zero aggregation tiles (DMA already elided via remap).
    @pl.when(flags_ref[i * nr + r] != 0)
    def _accumulate():
        msg = jnp.dot(a_ref[...], xfull_ref[...],
                      preferred_element_type=jnp.float32)    # (TN, I) f32
        out_ref[...] += jnp.dot(msg.astype(jnp.bfloat16), w_ref[...],
                                preferred_element_type=jnp.float32)  # (TN, O)

    if apply_relu:
        @pl.when(r == nr - 1)
        def _finalize():
            out_ref[...] = jnp.maximum(out_ref[...], 0.0)


def rgcn_conv_padded(x, agg_p, flags, remap_r, remap_i, basis, att, root, bias,
                     plan, *, apply_relu=False):
    """One RGCNConv layer on pre-padded graph operands. Returns [N, D_out] f32."""
    N, D_in = x.shape
    R = agg_p.shape[0]
    D_out = basis.shape[2]

    if R == 0:  # degenerate: only root/bias term
        out = x.astype(jnp.float32) @ root.astype(jnp.float32) + bias
        return jnp.maximum(out, 0.0) if apply_relu else out

    tn, n_p, n_tiles = plan.tn, plan.n_p, plan.n_tiles
    d_in_p, d_out_p = plan.d_in_p, plan.d_out_p

    # Precombine relation weights outside the kernel; all MXU operands in bf16.
    W = jnp.einsum("rb,bio->rio", att, basis)
    W_p = jnp.zeros((R, d_in_p, d_out_p), jnp.bfloat16).at[:, :D_in, :D_out].set(
        W.astype(jnp.bfloat16))
    x_p = jnp.zeros((n_p, d_in_p), jnp.bfloat16).at[:N, :D_in].set(
        x.astype(jnp.bfloat16))
    root_p = jnp.zeros((d_in_p, d_out_p), jnp.bfloat16).at[:D_in, :D_out].set(
        root.astype(jnp.bfloat16))
    bias_p = jnp.zeros((1, d_out_p), jnp.float32).at[0, :D_out].set(
        bias.astype(jnp.float32))

    kernel = functools.partial(_rgcn_kernel, apply_relu=apply_relu, tile_n=tn)

    def _build(use_pipeline_mode):
        resident = {"pipeline_mode": pl.Buffered(1)} if use_pipeline_mode else {}
        agg_mode = ({"pipeline_mode": pl.Buffered(plan.agg_bufs)}
                    if (use_pipeline_mode and plan.agg_bufs != 2) else {})
        return pl.pallas_call(
            kernel,
            out_shape=jax.ShapeDtypeStruct((n_p, d_out_p), jnp.float32),
            grid_spec=pltpu.PrefetchScalarGridSpec(
                num_scalar_prefetch=3,                 # flags, remap_r, remap_i
                grid=(n_tiles, R),
                in_specs=[
                    # x, full & resident (needed whole for A[r] @ X)
                    pl.BlockSpec((n_p, d_in_p),
                                 lambda i, r, f, mr, mi: (0, 0), **resident),
                    # agg[r, node-tile, :] with zero-tile DMA elision via remap
                    pl.BlockSpec((pl.Squeezed(), tn, n_p),
                                 lambda i, r, f, mr, mi:
                                     (mr[i * R + r], mi[i * R + r], 0),
                                 **agg_mode),
                    # W[r]
                    pl.BlockSpec((pl.Squeezed(), d_in_p, d_out_p),
                                 lambda i, r, f, mr, mi: (r, 0, 0)),
                    # root, bias (resident)
                    pl.BlockSpec((d_in_p, d_out_p),
                                 lambda i, r, f, mr, mi: (0, 0), **resident),
                    pl.BlockSpec((1, d_out_p),
                                 lambda i, r, f, mr, mi: (0, 0), **resident),
                ],
                out_specs=pl.BlockSpec((tn, d_out_p),
                                       lambda i, r, f, mr, mi: (i, 0)),
            ),
            compiler_params=pltpu.CompilerParams(
                dimension_semantics=("parallel", "arbitrary"),
                vmem_limit_bytes=plan.vmem_limit,
            ),
        )

    args = (flags, remap_r, remap_i, x_p, agg_p, W_p, root_p, bias_p)
    try:
        out_p = _build(True)(*args)
    except Exception:
        # TODO(synk): fallback if this Pallas build rejects pipeline_mode=Buffered.
        out_p = _build(False)(*args)

    return out_p[:N, :D_out]


# ----------------------------------------------------------------------------
# Dropout (RNG stream differs from torch's F.dropout but is deterministic)
# ----------------------------------------------------------------------------
def dropout(x, p, key):
    # TODO(synk): torch uses its own RNG stream; this is jax.random instead.
    if p <= 0.0:
        return x
    keep = jax.random.bernoulli(key, 1.0 - p, x.shape)
    return jnp.where(keep, x / (1.0 - p), 0.0)


# ----------------------------------------------------------------------------
# TransE forward: emb lookup -> RGCN1 -> ReLU -> dropout -> RGCN2
# ----------------------------------------------------------------------------
def transe_forward(params, entity, edge_index, edge_type, edge_norm,
                   dropout_p, dropout_key):
    ent = entity.squeeze()
    x = params["emb_e"][ent]                                   # (N, D)
    N, D = x.shape
    R = params["conv1"]["att"].shape[0]

    plan = make_plan(N, D, D)
    agg_p, flags, rmr, rmi = build_graph_operands(
        edge_index, edge_type, edge_norm, N, R, plan)

    c1 = params["conv1"]
    h = rgcn_conv_padded(x, agg_p, flags, rmr, rmi, c1["basis"], c1["att"],
                         c1["root"], c1["bias"], plan, apply_relu=True)
    h = dropout(h, dropout_p, dropout_key)

    c2 = params["conv2"]
    out = rgcn_conv_padded(h, agg_p, flags, rmr, rmi, c2["basis"], c2["att"],
                           c2["root"], c2["bias"], plan, apply_relu=False)
    return out


# ----------------------------------------------------------------------------
# Pure-JAX reference (mirrors the kernel's bf16 operand precision) — test only
# ----------------------------------------------------------------------------
def _dense_agg_ref(edge_index, edge_type, edge_norm, num_nodes, num_rel):
    src, dst = edge_index[0], edge_index[1]
    deg = jnp.zeros((num_nodes,), jnp.float32).at[dst].add(1.0)
    coef = edge_norm / jnp.maximum(deg, 1.0)[dst]
    agg = jnp.zeros((num_rel, num_nodes, num_nodes), jnp.float32)
    return agg.at[edge_type, dst, src].add(coef)


def _rgcn_ref(x, agg, basis, att, root, bias):
    xb = x.astype(jnp.bfloat16).astype(jnp.float32)
    ab = agg.astype(jnp.bfloat16).astype(jnp.float32)
    W = jnp.einsum("rb,bio->rio", att, basis).astype(jnp.bfloat16).astype(jnp.float32)
    rb = root.astype(jnp.bfloat16).astype(jnp.float32)
    msg = jnp.einsum("rnm,mi->rni", ab, xb)
    msg = msg.astype(jnp.bfloat16).astype(jnp.float32)
    aggr = jnp.einsum("rni,rio->no", msg, W)
    return aggr + xb @ rb + bias


# ----------------------------------------------------------------------------
# Deterministic parameter init (shapes from TransE.__init__ / RGCNConv.__init__)
# ----------------------------------------------------------------------------
def init_params(key, num_entities, embedding_dim, num_relations, num_bases):
    R2 = num_relations * 2
    ks = jax.random.split(key, 3)

    # emb_e: xavier_normal_, padding_idx=0 row zeroed
    std = (2.0 / (num_entities + embedding_dim)) ** 0.5
    emb_e = std * jax.random.normal(ks[0], (num_entities, embedding_dim), jnp.float32)
    emb_e = emb_e.at[0].set(0.0)

    def conv_params(k):
        kb, ka, kr, kbi = jax.random.split(k, 4)
        bound = 1.0 / (num_bases * embedding_dim) ** 0.5
        u = lambda kk, shp: jax.random.uniform(kk, shp, jnp.float32, -bound, bound)
        return {
            "basis": u(kb, (num_bases, embedding_dim, embedding_dim)),
            "att": u(ka, (R2, num_bases)),
            "root": u(kr, (embedding_dim, embedding_dim)),
            "bias": u(kbi, (embedding_dim,)),
        }

    return {
        "emb_e": emb_e,
        # emb_rel is unused in forward(); omitted.
        "conv1": conv_params(ks[1]),
        "conv2": conv_params(ks[2]),
    }


if __name__ == "__main__":
    key = jax.random.PRNGKey(0)
    k_param, k_ent, k_src, k_dst, k_typ, k_norm, k_drop = jax.random.split(key, 7)

    # small, module-consistent shapes
    num_entities = 40
    embedding_dim = 32
    num_relations = 3          # graph relation types -> RGCN uses 2*num_relations
    num_bases = 2
    N = 16                     # nodes in the subgraph
    E = 24                     # edges
    dropout_p = 0.2

    params = init_params(k_param, num_entities, embedding_dim,
                         num_relations, num_bases)

    entity = jax.random.randint(k_ent, (N, 1), 0, num_entities)          # squeezed in fwd
    edge_index = jnp.stack([
        jax.random.randint(k_src, (E,), 0, N),
        jax.random.randint(k_dst, (E,), 0, N),
    ])                                                                   # (2, E)
    edge_type = jax.random.randint(k_typ, (E,), 0, 2 * num_relations)    # (E,)
    edge_norm = jax.random.uniform(k_norm, (E,), jnp.float32, 0.5, 1.5)  # (E,)

    out = transe_forward(params, entity, edge_index, edge_type, edge_norm,
                         dropout_p, k_drop)
    out = jax.block_until_ready(out)
    assert out.shape == (N, embedding_dim)

    # sanity check: Pallas RGCN layer vs pure-JAX reference (conv1, pre-dropout)
    x0 = params["emb_e"][entity.squeeze()]
    R = 2 * num_relations
    plan = make_plan(N, embedding_dim, embedding_dim)
    agg_p, flags, rmr, rmi = build_graph_operands(
        edge_index, edge_type, edge_norm, N, R, plan)
    c1 = params["conv1"]
    got = rgcn_conv_padded(x0, agg_p, flags, rmr, rmi, c1["basis"], c1["att"],
                           c1["root"], c1["bias"], plan, apply_relu=True)
    got = jax.block_until_ready(got)

    agg_ref = _dense_agg_ref(edge_index, edge_type, edge_norm, N, R)
    want = jnp.maximum(_rgcn_ref(x0, agg_ref, c1["basis"], c1["att"],
                                 c1["root"], c1["bias"]), 0.0)
    assert jnp.allclose(got, want, atol=2e-2, rtol=2e-2), "mismatch vs reference"

    print("KERNEL_OK")
</pallas_src>

<mosaic_0001>
module attributes {stable_mosaic.version = 11 : i64} {
  func.func @_rgcn_kernel(%arg0: i32, %arg1: i32, %arg2: memref<6xi32, #tpu.memory_space<smem>>, %arg3: memref<6xi32, #tpu.memory_space<smem>>, %arg4: memref<6xi32, #tpu.memory_space<smem>>, %arg5: memref<128x128xbf16, #tpu.memory_space<vmem>>, %arg6: memref<1x128x128xbf16, #tpu.memory_space<vmem>>, %arg7: memref<1x128x128xbf16, #tpu.memory_space<vmem>>, %arg8: memref<128x128xbf16, #tpu.memory_space<vmem>>, %arg9: memref<1x128xf32, #tpu.memory_space<vmem>>, %arg10: memref<128x128xf32, #tpu.memory_space<vmem>>) attributes {dimension_semantics = [#tpu.dimension_semantics<parallel>, #tpu.dimension_semantics<arbitrary>], iteration_bounds = array<i64: 1, 6>, scalar_prefetch = 3 : i64, scratch_operands = 0 : i64, tpu.core_type = #tpu.core_type<tc>, window_params = [{pipeline_mode = #tpu.pipeline_mode<synchronous>, transform_indices = @transform_0, window_bounds = array<i64: 128, 128>}, {transform_indices = @transform_1, window_bounds = array<i64: 1, 128, 128>}, {transform_indices = @transform_2, window_bounds = array<i64: 1, 128, 128>}, {pipeline_mode = #tpu.pipeline_mode<synchronous>, transform_indices = @transform_3, window_bounds = array<i64: 128, 128>}, {pipeline_mode = #tpu.pipeline_mode<synchronous>, transform_indices = @transform_4, window_bounds = array<i64: 1, 128>}, {transform_indices = @transform_5, window_bounds = array<i64: 128, 128>}]} {
    %c0_i32 = arith.constant 0 : i32
    %0 = arith.cmpi eq, %arg1, %c0_i32 : i32
    %1 = arith.extui %0 : i1 to i32
    %c0_i32_0 = arith.constant 0 : i32
    %2 = arith.cmpi ne, %1, %c0_i32_0 : i32
    scf.if %2 {
      %c128_i32 = arith.constant 128 : i32
      %13 = arith.muli %arg0, %c128_i32 : i32
      %14 = tpu.assume_multiple %13, 128 : i32
      %15 = arith.index_cast %14 : i32 to index
      %c0 = arith.constant 0 : index
      %16 = vector.load %arg5[%15, %c0] : memref<128x128xbf16, #tpu.memory_space<vmem>>, vector<128x128xbf16>
      %c0_4 = arith.constant 0 : index
      %c0_5 = arith.constant 0 : index
      %17 = vector.load %arg8[%c0_4, %c0_5] : memref<128x128xbf16, #tpu.memory_space<vmem>>, vector<128x128xbf16>
      %cst = arith.constant dense<0.000000e+00> : vector<128x128xf32>
      %18 = tpu.matmul %16, %17, %cst {dimension_numbers = #tpu.dot_dimension_numbers<[1], [0], [0], [1], [0, 0, 1, 1], [], []>} : vector<128x128xbf16>, vector<128x128xbf16>, vector<128x128xf32> -> vector<128x128xf32>
      %c0_6 = arith.constant 0 : index
      %c0_7 = arith.constant 0 : index
      %19 = vector.load %arg9[%c0_6, %c0_7] : memref<1x128xf32, #tpu.memory_space<vmem>>, vector<1x128xf32>
      %20 = vector.broadcast %19 : vector<1x128xf32> to vector<128x128xf32>
      %21 = arith.addf %18, %20 : vector<128x128xf32>
      %c0_8 = arith.constant 0 : index
      %c0_9 = arith.constant 0 : index
      %22 = vector.load %arg10[%c0_8, %c0_9] : memref<128x128xf32, #tpu.memory_space<vmem>>, vector<128x128xf32>
      tpu.vector_store %arg10[%c0_8, %c0_9], %21 {strides = array<i32>} : memref<128x128xf32, #tpu.memory_space<vmem>>, vector<128x128xf32>,
    } else {
    }
    %c6_i32 = arith.constant 6 : i32
    %3 = arith.muli %arg0, %c6_i32 : i32
    %4 = arith.addi %3, %arg1 : i32
    %5 = arith.index_cast %4 : i32 to index
    %6 = memref.load %arg2[%5] : memref<6xi32, #tpu.memory_space<smem>>
    %c0_i32_1 = arith.constant 0 : i32
    %7 = arith.cmpi ne, %6, %c0_i32_1 : i32
    %8 = arith.extui %7 : i1 to i32
    %c0_i32_2 = arith.constant 0 : i32
    %9 = arith.cmpi ne, %8, %c0_i32_2 : i32
    scf.if %9 {
      %c0 = arith.constant 0 : index
      %c0_4 = arith.constant 0 : index
      %c0_5 = arith.constant 0 : index
      %13 = vector.load %arg6[%c0, %c0_4, %c0_5] : memref<1x128x128xbf16, #tpu.memory_space<vmem>>, vector<1x128x128xbf16>
      %14 = vector.shape_cast %13 : vector<1x128x128xbf16> to vector<128x128xbf16>
      %c0_6 = arith.constant 0 : index
      %c0_7 = arith.constant 0 : index
      %15 = vector.load %arg5[%c0_6, %c0_7] : memref<128x128xbf16, #tpu.memory_space<vmem>>, vector<128x128xbf16>
      %cst = arith.constant dense<0.000000e+00> : vector<128x128xf32>
      %16 = tpu.matmul %14, %15, %cst {dimension_numbers = #tpu.dot_dimension_numbers<[1], [0], [0], [1], [0, 0, 1, 1], [], []>} : vector<128x128xbf16>, vector<128x128xbf16>, vector<128x128xf32> -> vector<128x128xf32>
      %c0_8 = arith.constant 0 : index
      %c0_9 = arith.constant 0 : index
      %17 = vector.load %arg10[%c0_8, %c0_9] : memref<128x128xf32, #tpu.memory_space<vmem>>, vector<128x128xf32>
      %18 = arith.truncf %16 : vector<128x128xf32> to vector<128x128xbf16>
      %c0_10 = arith.constant 0 : index
      %c0_11 = arith.constant 0 : index
      %c0_12 = arith.constant 0 : index
      %19 = vector.load %arg7[%c0_10, %c0_11, %c0_12] : memref<1x128x128xbf16, #tpu.memory_space<vmem>>, vector<1x128x128xbf16>
      %20 = vector.shape_cast %19 : vector<1x128x128xbf16> to vector<128x128xbf16>
      %cst_13 = arith.constant dense<0.000000e+00> : vector<128x128xf32>
      %21 = tpu.matmul %18, %20, %cst_13 {dimension_numbers = #tpu.dot_dimension_numbers<[1], [0], [0], [1], [0, 0, 1, 1], [], []>} : vector<128x128xbf16>, vector<128x128xbf16>, vector<128x128xf32> -> vector<128x128xf32>
      %22 = arith.addf %17, %21 : vector<128x128xf32>
      %c0_14 = arith.constant 0 : index
      %c0_15 = arith.constant 0 : index
      %23 = vector.load %arg10[%c0_14, %c0_15] : memref<128x128xf32, #tpu.memory_space<vmem>>, vector<128x128xf32>
      tpu.vector_store %arg10[%c0_14, %c0_15], %22 {strides = array<i32>} : memref<128x128xf32, #tpu.memory_space<vmem>>, vector<128x128xf32>,
    } else {
    }
    %c5_i32 = arith.constant 5 : i32
    %10 = arith.cmpi eq, %arg1, %c5_i32 : i32
    %11 = arith.extui %10 : i1 to i32
    %c0_i32_3 = arith.constant 0 : i32
    %12 = arith.cmpi ne, %11, %c0_i32_3 : i32
    scf.if %12 {
      %c0 = arith.constant 0 : index
      %c0_4 = arith.constant 0 : index
      %13 = vector.load %arg10[%c0, %c0_4] : memref<128x128xf32, #tpu.memory_space<vmem>>, vector<128x128xf32>
      %cst = arith.constant 0.000000e+00 : f32
      %14 = vector.broadcast %cst : f32 to vector<128x128xf32>
      %15 = arith.maximumf %13, %14 : vector<128x128xf32>
      %c0_5 = arith.constant 0 : index
      %c0_6 = arith.constant 0 : index
      %16 = vector.load %arg10[%c0_5, %c0_6] : memref<128x128xf32, #tpu.memory_space<vmem>>, vector<128x128xf32>
      tpu.vector_store %arg10[%c0_5, %c0_6], %15 {strides = array<i32>} : memref<128x128xf32, #tpu.memory_space<vmem>>, vector<128x128xf32>,
    } else {
    }
    return
  }
  func.func @transform_0(%arg0: i32, %arg1: i32, %arg2: memref<6xi32, #tpu.memory_space<smem>>, %arg3: memref<6xi32, #tpu.memory_space<smem>>, %arg4: memref<6xi32, #tpu.memory_space<smem>>) -> (i32, i32) {
    %c0_i32 = arith.constant 0 : i32
    %c0_i32_0 = arith.constant 0 : i32
    %c0_i32_1 = arith.constant 0 : i32
    return %c0_i32, %c0_i32_0 : i32, i32
  }
  func.func @transform_1(%arg0: i32, %arg1: i32, %arg2: memref<6xi32, #tpu.memory_space<smem>>, %arg3: memref<6xi32, #tpu.memory_space<smem>>, %arg4: memref<6xi32, #tpu.memory_space<smem>>) -> (i32, i32, i32) {
    %c6_i32 = arith.constant 6 : i32
    %0 = arith.muli %arg0, %c6_i32 : i32
    %1 = arith.addi %0, %arg1 : i32
    %2 = arith.index_cast %1 : i32 to index
    %3 = memref.load %arg3[%2] : memref<6xi32, #tpu.memory_space<smem>>
    %c6_i32_0 = arith.constant 6 : i32
    %4 = arith.muli %arg0, %c6_i32_0 : i32
    %5 = arith.addi %4, %arg1 : i32
    %6 = arith.index_cast %5 : i32 to index
    %7 = memref.load %arg4[%6] : memref<6xi32, #tpu.memory_space<smem>>
    %c0_i32 = arith.constant 0 : i32
    %c0_i32_1 = arith.constant 0 : i32
    return %3, %7, %c0_i32 : i32, i32, i32
  }
  func.func @transform_2(%arg0: i32, %arg1: i32, %arg2: memref<6xi32, #tpu.memory_space<smem>>, %arg3: memref<6xi32, #tpu.memory_space<smem>>, %arg4: memref<6xi32, #tpu.memory_space<smem>>) -> (i32, i32, i32) {
    %c0_i32 = arith.constant 0 : i32
    %c0_i32_0 = arith.constant 0 : i32
    %c0_i32_1 = arith.constant 0 : i32
    return %arg1, %c0_i32, %c0_i32_0 : i32, i32, i32
  }
  func.func @transform_3(%arg0: i32, %arg1: i32, %arg2: memref<6xi32, #tpu.memory_space<smem>>, %arg3: memref<6xi32, #tpu.memory_space<smem>>, %arg4: memref<6xi32, #tpu.memory_space<smem>>) -> (i32, i32) {
    %c0_i32 = arith.constant 0 : i32
    %c0_i32_0 = arith.constant 0 : i32
    %c0_i32_1 = arith.constant 0 : i32
    return %c0_i32, %c0_i32_0 : i32, i32
  }
  func.func @transform_4(%arg0: i32, %arg1: i32, %arg2: memref<6xi32, #tpu.memory_space<smem>>, %arg3: memref<6xi32, #tpu.memory_space<smem>>, %arg4: memref<6xi32, #tpu.memory_space<smem>>) -> (i32, i32) {
    %c0_i32 = arith.constant 0 : i32
    %c0_i32_0 = arith.constant 0 : i32
    %c0_i32_1 = arith.constant 0 : i32
    return %c0_i32, %c0_i32_0 : i32, i32
  }
  func.func @transform_5(%arg0: i32, %arg1: i32, %arg2: memref<6xi32, #tpu.memory_space<smem>>, %arg3: memref<6xi32, #tpu.memory_space<smem>>, %arg4: memref<6xi32, #tpu.memory_space<smem>>) -> (i32, i32) {
    %c0_i32 = arith.constant 0 : i32
    %c0_i32_0 = arith.constant 0 : i32
    return %arg0, %c0_i32 : i32, i32
  }
}

</mosaic_0001>

<bundles_post_ra>
// kernel: tpu_custom_call.1
= control target key start
LH: loop header
LB: loop body
LE: loop exit
PB: predicated region body
PF: predicated region fallthrough
CT: control target
= control target key end

     0   :  { %s2434_s0 = inlined_call_operand.hbm [shape: s32[6], index: 0, kind: input, shape index: {}]   ;;  %s2435_s3 = inlined_call_operand.hbm [shape: bf16[128,128], index: 3, kind: input, shape index: {}]   ;;  %s2436_s4 = inlined_call_operand.hbm [shape: bf16[6,128,128], index: 4, kind: input, shape index: {}]   ;;  %s2437_s5 = inlined_call_operand.hbm [shape: bf16[6,128,128], index: 5, kind: input, shape index: {}]   ;;  %s2438_s6 = inlined_call_operand.hbm [shape: bf16[128,128], index: 6, kind: input, shape index: {}]   ;;  %s2439_s7 = inlined_call_operand.hbm [shape: f32[1,128], index: 7, kind: input, shape index: {}]   ;;  %s2440_s8 = inlined_call_operand.hbm [shape: f32[128,128], index: 8, kind: output, shape index: {}]   ;;  %s2441_s1 = inlined_call_operand.hbm [shape: s32[6], index: 1, kind: input, shape index: {}]   ;;  %s2442_s2 = inlined_call_operand.hbm [shape: s32[6], index: 2, kind: input, shape index: {}]  }
   0x1   :  { %2463 = sst [smem:[#allocation31_spill]] %s2438_s6  ;;  %s1653_s29 = scalar_lea.hbm %s2434_s0, 16 }
   0x2   :  { %2464 = sst [smem:[#allocation32_spill]] %s2440_s8  ;;  %p1654_p0 = scmp.ne.s32.totalorder %s2434_s0, %s1653_s29 }
   0x3   :  { %p1657_p1 = scmp.lt.u32.totalorder %s1653_s29, %s2434_s0 }
   0x5   :  { %p1659_p2 = pnand %p1657_p1, %p1654_p0 }
   0x7   :  { %1662 = shalt.err (!%p1659_p2)  }
   0x8   :  { %s1947_s12 = smov [#allocation3]   ;;  %s1663_s17 = scalar_lea.hbm %s2441_s1, 16 }
   0x9   :  { %14 = dma.hbm_to_smem %s2434_s0, 16, %s1947_s12, [#allocation2] }
   0xa   :  { %p1664_p3 = scmp.ne.s32.totalorder %s2441_s1, %s1663_s17  ;;  %p1667_p4 = scmp.lt.u32.totalorder %s1663_s17, %s2441_s1 }
   0xc   :  { %p1669_p5 = pnand %p1667_p4, %p1664_p3 }
   0xe   :  { %1672 = shalt.err (!%p1669_p5)  }
   0xf   :  { %s1948_s22 = smov [#allocation4]   ;;  %s1673_s26 = scalar_lea.hbm %s2442_s2, 16 }
  0x10   :  { %16 = dma.hbm_to_smem %s2441_s1, 16, %s1948_s22, [#allocation2] }
  0x11   :  { %p1674_p6 = scmp.ne.s32.totalorder %s2442_s2, %s1673_s26  ;;  %p1677_p7 = scmp.lt.u32.totalorder %s1673_s26, %s2442_s2 }
  0x13   :  { %p1679_p8 = pnand %p1677_p7, %p1674_p6 }
  0x15   :  { %1682 = shalt.err (!%p1679_p8)  }
  0x16   :  { %s1949_s9 = smov [#allocation5]  }
  0x17   :  { %18 = dma.hbm_to_smem %s2442_s2, 16, %s1949_s9, [#allocation2] }
  0x18   :  { %1889 = dma.done.wait [#allocation2], 48 }
  0x19   :  { %1890 = vsyncadd [#allocation2], 4294967248 }
  0x1a   :  { %20 = sfence }
  0x1b   :  { %21 = vsyncpa [#allocation7], 0 }
  0x1c   :  { %22 = vsyncpa [#allocation10], 0 }
  0x1d   :  { %24 = vsyncpa [#allocation10 + $0x1], 0 }
  0x1e   :  { %25 = vsyncpa [#allocation13], 0 }
  0x1f   :  { %26 = vsyncpa [#allocation8], 0  ;;  %s2041_s1 = smov 0   ;;  %s2043_s12 = smov 0  }
  0x20   :  { %s2045_s13 = smov 0   ;;  %s2047_s14 = smov 0  }
  0x21   :  { %s2049_s15 = smov 0   ;;  %s2051_s16 = smov 0  }
  0x22   :  { %s2053_s2 = smov 0   ;;  %s2055_s17 = smov 0  }
  0x23   :  { %s2057_s18 = smov 0  }
  0x24 LB: > { %2465 = sst [smem:[#allocation26_spill]] %s1929_s15  ;;  %s2083_s19 = sadd.s32 4294967295, %s1945_s18   ;;  %s1945_s18 = sphi %s2057_s18, %s32_s18   ;;  %s1941_s17 = sphi %s2055_s17, %s2512_s17   ;;  %s1937_s2 = sphi %s2053_s2, %s2511_s2   ;;  %s1933_s16 = sphi %s2051_s16, %s2510_s16   ;;  %s1929_s15 = sphi %s2049_s15, %s2509_s15   ;;  %s1925_s14 = sphi %s2047_s14, %s2505_s14   ;;  %s1921_s13 = sphi %s2045_s13, %s2508_s13   ;;  %s1917_s12 = sphi %s2043_s12, %s2507_s12   ;;  %s1913_s1 = sphi %s2041_s1, %s2506_s1  }
  0x25   : > { %2466 = sst [smem:[#allocation27_spill]] %s1937_s2  ;;  %p95_p9 = scmp.ne.s32.totalorder %s1929_s15, %s1925_s14 }
  0x26   : > { %2467 = sst [smem:[#allocation28_spill]] %s2083_s19  ;;  %p2443_p10 = scmp.eq.s32.totalorder %s2083_s19, 0 }
  0x27   : > { %p121_p11 = scmp.ne.s32.totalorder %s1917_s12, %s1913_s1  ;;  %p1249_p12 = scmp.ge.s32.totalorder %s1945_s18, 1 }
  0x28   : > { %p200_p13 = scmp.lt.s32.totalorder %s1945_s18, 7  ;;  %p2092_p0 = por %p2443_p10, %p95_p9 }
  0x29   : > { %p2098_p1 = por %p121_p11, %p2443_p10  ;;  %s1950_s23 = smov [#allocation12]  }
  0x2a   : > { %s2468_s20 = scalar_select %p2092_p0, 1, 0 }
  0x2b   : > { %s2470_s21 = scalar_select %p2098_p1, 1, 0 }
  0x2c   : > { %2469 = sst [smem:[#allocation29_spill]] %s2468_s20  ;;  %p2102_p2 = pnand %p1249_p12, %p200_p13 }
  0x2d   : > { %2471 = sst [smem:[#allocation30_spill]] %s2470_s21  ;;  %s225_s24 = sshll.u32 %s1950_s23, 4  ;;  %s226_s24 = int_to_ptr.vmem [resolvable:$true] %s225_s24 }
  0x2e   : > { %s2472_s22 = scalar_select %p2102_p2, 1, 0 }
  0x2f   : > { %p1500_p3 = pneg %p2102_p2  ;;  %s2474_s6 = sld [smem:[#allocation31_spill]] }
  0x31   : > { %p2110_p4 = pnand %p1500_p3, %p2443_p10 }
  0x33   : > { %p2122_p6 = pneg %p2110_p4 }
  0x35   : > { %s1683_s27 = scalar_lea.hbm %s2474_s6, 1024 }
  0x36   : > { %p1684_p5 = scmp.ne.s32.totalorder %s2474_s6, %s1683_s27  ;;  %p1690_p9 = scmp.lt.u32.totalorder %s1683_s27, %s2474_s6 }
  0x38   : > { %p1686_p7 = pnand %p2122_p6, %p1684_p5 }
  0x3a   : > { %p1687_p8 = pneg %p1686_p7 }
  0x3c   : > { %p1692_p11 = pnand %p1690_p9, %p1687_p8 }
  0x3e   : > { %1695 = shalt.err (!%p1692_p11)
}
  0x3f   : > { %s1696_s11 = scalar_lea.vmem %s226_s24, 1024  ;;  %p1704_p10 = scmp.lt.s32.totalorder %s226_s24, %s226_s24 }
  0x40   : > { %p1697_p12 = scmp.ne.s32.totalorder %s226_s24, %s1696_s11  ;;  %p1705_p1 = scmp.lt.s32.totalorder %s1696_s11, %s1696_s11 }
  0x42   : > { %p1699_p13 = pnand %p1697_p12, %p2122_p6  ;;  %p1706_p0 = por %p1705_p1, %p1704_p10 }
  0x44   : > { %p1700_p3 = pneg %p1699_p13 }
  0x46   : > { %p1707_p2 = pnand %p1706_p0, %p1700_p3 }
  0x48   : > { %1710 = shalt.err (!%p1707_p2)
}
  0x49   : > { %s2447_s1 = smov 64   ;;  %s2449_s14 = smov 4  }
  0x4a   : > { %1506 = dma.hbm_to_vmem [thread:$0]  (!%p2110_p4), %s2474_s6, 1024, %s226_s24, [#allocation13], %s2447_s1, %s2447_s1, %s2449_s14  }
  0x4b   : > { %s41_s26 = sadd.s32 1, %s1941_s17  ;;  %s71_s27 = sld [smem:[#allocation4 + %s1941_s17]] }
  0x4c   : > { %p42_p10 = scmp.ge.s32.totalorder %s41_s26, 6  ;;  %s72_s28 = sld [smem:[#allocation5 + %s1941_s17]] }
  0x4d   : > { %s82_s29 = sadd.s32 1, %s1933_s16  ;;  %p89_p0 = scmp.ne.s32.totalorder %s1933_s16, %s1929_s15 }
  0x4e   : > { %s2514_s26 = smov (%p42_p10, %s41_s26), 0  ;;  %p2461_p1 = scmp.eq.s32.totalorder %s1945_s18, 0 }
  0x4f   : > { %s75_s9 = sld [smem:[#allocation4 + %s2514_s26]]  ;;  %p2460_p5 = scmp.lt.s32.totalorder %s1945_s18, 6 }
  0x50   : > { %s76_s10 = sld [smem:[#allocation5 + %s2514_s26]]  ;;  %p2154_p2 = por %p2461_p1, %p89_p0 }
  0x51   : > { %s252_s23 = sand.u32 1, %s1933_s16  }
  0x52   : > { %s1254_s25 = sshll.u32 %s252_s23, 6  ;;  %p2165_p7 = pnand %p2460_p5, %p2154_p2 }
  0x53   : > { %s1482_s14 = scalar_select %p2154_p2, [#allocation4], [#allocation16] }
  0x54   : > { %s2477_s1 = scalar_select %p2165_p7, 1, 0 }
  0x55   : > { %s77_s6 = ssub.s32 %s71_s27, %s75_s9  ;;  %s254_s21 = scalar_lea.vmem [#allocation9], %s1254_s25 }
  0x56   : > { %s78_s8 = ssub.s32 %s72_s28, %s76_s10  ;;  %s267_s20 = sshll.u32 %s254_s21, 4  ;;  %s2171_s20 = int_to_ptr.vmem [resolvable:$true] %s267_s20 }
  0x57   : > { %s79_s2 = sor.u32 %s78_s8, %s77_s6  ;;  %s2516_s14 = smov (!%p2460_p5, %s1482_s14), [#allocation18] }
  0x58   : > { %p80_p8 = scmp.eq.s32.totalorder %s79_s2, 0  ;;  %s1953_s8 = smov [#allocation6]  }
  0x59   : > { %s1483_s24 = scalar_select %p2154_p2, %s1941_s17, 0 }
  0x5a   : > { %s2177_s23 = scalar_select %p80_p8, %s1933_s16, %s82_s29  }
  0x5b   : > { %s2518_s24 = smov (!%p2460_p5, %s1483_s24), 0  ;;  %s212_s2 = sshll.u32 %s1953_s8, 4  ;;  %s213_s2 = int_to_ptr.vmem [resolvable:$true] %s212_s2 }
  0x5c   : > { %s1484_s15 = scalar_select %p2154_p2, [#allocation5], [#allocation17] }
  0x5d   : > { %s2185_s19 = sld [smem:[%s2516_s14 + %s2518_s24]]  ;;  %s1954_s21 = smov [#allocation14]  }
  0x5e   : > { %s2520_s15 = smov (!%p2460_p5, %s1484_s15), [#allocation19]  ;;  %s239_s27 = sshll.u32 %s1954_s21, 4  ;;  %s2192_s27 = int_to_ptr.vmem [resolvable:$true] %s239_s27 }
  0x5f   : > { %s2189_s6 = sld [smem:[%s2520_s15 + %s2518_s24]]  ;;  %s1711_s10 = scalar_lea.hbm %s2435_s3, 1024 }
  0x60   : > { %p1712_p9 = scmp.ne.s32.totalorder %s2435_s3, %s1711_s10  ;;  %p1718_p13 = scmp.lt.u32.totalorder %s1711_s10, %s2435_s3 }
  0x62   : > { %p1714_p11 = pnand %p1712_p9, %p2122_p6 }
  0x64   : > { %p1715_p12 = pneg %p1714_p11 }
  0x66   : > { %p1720_p3 = pnand %p1718_p13, %p1715_p12 }
  0x68   : > { %1723 = shalt.err (!%p1720_p3)
}
  0x69   : > { %s1724_s25 = scalar_lea.vmem %s213_s2, 1024  ;;  %p1732_p8 = scmp.lt.s32.totalorder %s213_s2, %s213_s2 }
  0x6a   : > { %p1725_p10 = scmp.ne.s32.totalorder %s213_s2, %s1724_s25  ;;  %p1733_p5 = scmp.lt.s32.totalorder %s1724_s25, %s1724_s25 }
  0x6c   : > { %p1727_p0 = pnand %p1725_p10, %p2122_p6  ;;  %p1734_p1 = por %p1733_p5, %p1732_p8 }
  0x6e   : > { %p1728_p2 = pneg %p1727_p0 }
  0x70   : > { %p1735_p7 = pnand %p1734_p1, %p1728_p2 }
  0x72   : > { %1738 = shalt.err (!%p1735_p7)
}
  0x73   : > { %s2478_s8 = smov 4   ;;  %s2479_s21 = smov 64  }
  0x74   : > { %1503 = dma.hbm_to_vmem [thread:$0]  (!%p2110_p4), %s2435_s3, 1024, %s213_s2, [#allocation7], %s2479_s21, %s2479_s21, %s2478_s8  }
  0x75   : > { %s1739_s14 = scalar_lea.hbm %s2439_s7, 16 }
  0x76   : > { %p1740_p5 = scmp.ne.s32.totalorder %s2439_s7, %s1739_s14  ;;  %p1746_p9 = scmp.lt.u32.totalorder %s1739_s14, %s2439_s7 }
  0x78   : > { %p1742_p1 = pnand %p1740_p5, %p2122_p6 }
  0x7a   : > { %p1743_p7 = pneg %p1742_p1 }
  0x7c   : > { %p1748_p11 = pnand %p1746_p9, %p1743_p7 }
  0x7e   : > { %1751 = shalt.err (!%p1748_p11)
}
  0x7f   : > { %s1752_s2 = scalar_lea.vmem %s2192_s27, 16  ;;  %s1759_s29 = scalar_lea.vmem %s2192_s27, 32 }
  0x80   : > { %p1753_p12 = scmp.ne.s32.totalorder %s2192_s27, %s1752_s2  ;;  %p1760_p10 = scmp.lt.s32.totalorder %s2192_s27, %s2192_s27 }
  0x81   : > { %p1761_p0 = scmp.lt.s32.totalorder %s1759_s29, %s1752_s2 }
  0x82   : > { %p1755_p13 = pnand %p1753_p12, %p2122_p6 }
  0x83   : > { %p1762_p2 = por %p1761_p0, %p1760_p10 }
  0x84   : > { %p1756_p3 = pneg %p1755_p13 }
  0x86   : > { %p1763_p8 = pnand %p1762_p2, %p1756_p3 }
  0x88   : > { %1766 = shalt.err (!%p1763_p8)
}
  0x89   : > { %1509 = dma.hbm_to_vmem [thread:$0]  (!%p2110_p4), %s2439_s7, 16, %s2192_s27, [#allocation13]  }
  0x8a   : > { %s1255_s30 = sshll.u32 %s2189_s6, 4  ;;  %s2480_s10 = sshll.u32 %s2185_s19, 4 }
  0x8b   : > { %s264_s11 = sadd.s32 %s2480_s10, %s1255_s30  ;;  %s105_s15 = ssub.s32 %s1941_s17, %s2514_s26 }
  0x8c   : > { %s1257_s14 = sshll.u32 %s264_s11, 6  ;;  %p2249_p6 = scmp.eq.s32.totalorder %s105_s15, 0 }
  0x8d   : > { %s2247_s0 = scalar_lea.hbm %s2436_s4, %s1257_s14  ;;  %s2482_s29 = sand.u32 1, %s1945_s18  }
  0x8e   : > { %s2255_s27 = scalar_lea.sflag [#allocation10], %s2482_s29  ;;  %s1767_s19 = scalar_lea.hbm %s2247_s0, 1024 }
  0x8f   : > { %p1768_p4 = scmp.ne.s32.totalorder %s2247_s0, %s1767_s19  ;;  %p2483_p5 = scmp.ne.s32.totalorder %s2477_s1, 0 }
  0x90   : > { %s1772_s9 = scalar_lea.hbm %s2436_s4, 6144  ;;  %p1773_p11 = scmp.lt.u32.totalorder %s2247_s0, %s2436_s4 }
  0x91   : > { %p1769_p1 = pneg %p2483_p5  ;;  %p1774_p12 = scmp.lt.u32.totalorder %s1772_s9, %s1767_s19 }
  0x92   : > { %p1776_p3 = scmp.lt.u32.totalorder %s1767_s19, %s2247_s0 }
  0x93   : > { %p1770_p7 = pnand %p1769_p1, %p1768_p4  ;;  %p1775_p13 = por %p1774_p12, %p1773_p11 }
  0x95   : > { %p1771_p9 = pneg %p1770_p7  ;;  %p1777_p10 = por %p1776_p3, %p1775_p13 }
  0x97   : > { %p1778_p0 = pnand %p1777_p10, %p1771_p9 }
  0x99   : > { %1781 = shalt.err (!%p1778_p0)
}
  0x9a   : > { %s1782_s11 = scalar_lea.vmem %s2171_s20, 1024  ;;  %s1955_s14 = smov [#allocation9]  }
  0x9b   : > { %p1783_p2 = scmp.ne.s32.totalorder %s2171_s20, %s1782_s11  ;;  %s1787_s15 = sshll.u32 %s1955_s14, 4  ;;  %s1788_s15 = int_to_ptr.vmem [resolvable:$false] %s1787_s15 }
  0x9c   : > { %s1789_s24 = scalar_lea.vmem %s1788_s15, 2048  ;;  %p1790_p7 = scmp.lt.s32.totalorder %s2171_s20, %s1788_s15 }
  0x9d   : > { %p1785_p8 = pnand %p1783_p2, %p1769_p1  ;;  %p1791_p11 = scmp.lt.s32.totalorder %s1789_s24, %s1782_s11 }
  0x9f   : > { %p1786_p4 = pneg %p1785_p8  ;;  %p1792_p12 = por %p1791_p11, %p1790_p7 }
  0xa1   : > { %p1793_p13 = pnand %p1792_p12, %p1786_p4 }
  0xa3   : > { %1796 = shalt.err (!%p1793_p13)
}
  0xa4   : > { %1517 = dma.hbm_to_vmem [thread:$0]  (!%p2483_p5), %s2247_s0, 1024, %s2171_s20, %s2255_s27, %s2479_s21, %s2479_s21, %s2478_s8  }
  0xa5   : > { %s108_s25 = sadd.s32 1, %s1921_s13  ;;  %p115_p1 = scmp.ne.s32.totalorder %s1921_s13, %s1917_s12 }
  0xa6   : > { %s2292_s1 = scalar_select %p2249_p6, %s1921_s13, %s108_s25  }
  0xa7   : > { %p2484_p9 = scmp.eq.s32.totalorder %s1945_s18, 0  ;;  %s279_s29 = sand.u32 1, %s1921_s13  }
  0xa8   : > { %s1258_s19 = sshll.u32 %s279_s29, 6  ;;  %s1315_s6 = sshll.u32 %s1941_s17, 10 }
  0xa9   : > { %p117_p3 = por %p115_p1, %p2484_p9  ;;  %s2301_s30 = scalar_lea.hbm %s2437_s5, %s1315_s6 }
  0xaa   : > { %s281_s20 = scalar_lea.vmem [#allocation11], %s1258_s19  ;;  %p2485_p5 = scmp.lt.s32.totalorder %s1945_s18, 6 }
  0xab   : > { %s288_s0 = sshll.u32 %s281_s20, 4  ;;  %s1797_s10 = scalar_lea.hbm %s2301_s30, 1024  ;;  %s2309_s0 = int_to_ptr.vmem [resolvable:$true] %s288_s0 }
  0xac   : > { %p2305_p10 = pnand %p2485_p5, %p117_p3  ;;  %p1798_p6 = scmp.ne.s32.totalorder %s2301_s30, %s1797_s10 }
  0xad   : > { %s1802_s15 = scalar_lea.hbm %s2437_s5, 6144  ;;  %p1803_p4 = scmp.lt.u32.totalorder %s2301_s30, %s2437_s5 }
  0xae   : > { %p1799_p0 = pneg %p2305_p10  ;;  %p1804_p7 = scmp.lt.u32.totalorder %s1802_s15, %s1797_s10 }
  0xaf   : > { %p1806_p12 = scmp.lt.u32.totalorder %s1797_s10, %s2301_s30 }
  0xb0   : > { %p1800_p2 = pnand %p1799_p0, %p1798_p6  ;;  %p1805_p11 = por %p1804_p7, %p1803_p4 }
  0xb2   : > { %p1801_p8 = pneg %p1800_p2  ;;  %p1807_p13 = por %p1806_p12, %p1805_p11 }
  0xb4   : > { %p1808_p1 = pnand %p1807_p13, %p1801_p8 }
  0xb6   : > { %1811 = shalt.err (!%p1808_p1)
}
  0xb7   : > { %s1812_s29 = scalar_lea.vmem %s2309_s0, 1024  ;;  %s1956_s19 = smov [#allocation11]  }
  0xb8   : > { %p1813_p9 = scmp.ne.s32.totalorder %s2309_s0, %s1812_s29  ;;  %s1817_s6 = sshll.u32 %s1956_s19, 4  ;;  %s1818_s6 = int_to_ptr.vmem [resolvable:$false] %s1817_s6 }
  0xb9   : > { %s1819_s28 = scalar_lea.vmem %s1818_s6, 2048  ;;  %p1820_p6 = scmp.lt.s32.totalorder %s2309_s0, %s1818_s6 }
  0xba   : > { %p1815_p3 = pnand %p1813_p9, %p1799_p0  ;;  %p1821_p2 = scmp.lt.s32.totalorder %s1819_s28, %s1812_s29 }
  0xbc   : > { %p1816_p5 = pneg %p1815_p3  ;;  %p1822_p4 = por %p1821_p2, %p1820_p6 }
  0xbe   : > { %p1823_p7 = pnand %p1822_p4, %p1816_p5 }
  0xc0   : > { %1826 = shalt.err (!%p1823_p7)
}
  0xc1   : > { %1520 = dma.hbm_to_vmem [thread:$0]  (!%p2305_p10), %s2301_s30, 1024, %s2309_s0, %s2255_s27, %s2479_s21, %s2479_s21, %s2478_s8  }
  0xc2   : > { %p2487_p0 = scmp.ne.s32.totalorder %s2472_s22, 0 }
  0xc3   : > { %s2488_s9 = sld [smem:[#allocation28_spill]] (!%p2487_p0) }
  0xc4   : > { %300 = sbr.rel (%p2487_p0) target bundleno = 1052 (0x41c), region = 40 }
  0xc9   : > { %p2489_p8 = scmp.eq.s32.totalorder (!%p2487_p0), %s2488_s9, 0 }
  0xcb   : > { %1892 = dma.done.wait (%p2489_p8), [#allocation7], 1024   ;;  %p2490_p11 = pmov %p2489_p8 }
  0xcc   : > { %s2491_s20 = sld [smem:[#allocation26_spill]]  ;;  %s2492_s10 = sld [smem:[#allocation29_spill]] }
  0xcd   : > { %1894 = vsyncadd (%p2490_p11), [#allocation7], 4294966272  ;;  %s306_s2 = sand.u32 1, %s2488_s9  }
  0xce   : > { %s307_s15 = scalar_lea.sflag [#allocation10], %s306_s2 }
  0xd2   : > { %s308_s11 = sand.u32 1, %s2491_s20   ;;  %p2493_p12 = scmp.ne.s32.totalorder %s2492_s10, 0 }
  0xd3   : > { %s1263_s14 = sshll.u32 %s308_s11, 6 }
  0xd4   : > { %s2348_s24 = scalar_lea.vmem [#allocation9], %s1263_s14 }
  0xd5   : > { %1896 = dma.done.wait (%p2493_p12), %s307_s15, 1024  }
  0xd6   : > { %1898 = vsyncadd (%p2493_p12), %s307_s15, 4294966272  ;;  %s2494_s22 = sld [smem:[#allocation30_spill]]  ;;  %s317_s8 = sand.u32 1, %s1917_s12  }
  0xd7   : > { %s1264_s21 = sshll.u32 %s317_s8, 6 }
  0xd8   : > { %s2355_s27 = scalar_lea.vmem [#allocation11], %s1264_s21 }
  0xdc   : > { %p2495_p10 = scmp.ne.s32.totalorder %s2494_s22, 0 }
  0xde   : > { %1900 = dma.done.wait (%p2495_p10), %s307_s15, 1024  }
  0xdf   : > { %1902 = vsyncadd (%p2495_p10), %s307_s15, 4294966272  ;;  %p2496_p13 = pmov %p2489_p8 }
  0xe0   : > { %p2497_p1 = pmov %p2489_p8 }
  0xe1   : > { %1904 = dma.done.wait (%p2496_p13), [#allocation13], 1040  }
  0xe2   : > { %1906 = vsyncadd (%p2497_p1), [#allocation13], 4294966256  ;;  %s2498_s30 = sld [smem:[#allocation27_spill]] }
  0xe8   : > { %p1267_p9 = scmp.ne.s32.totalorder %s2498_s30, 0 }
  0xe9   : > { %v1613_v0 = vld [vmem:[#allocation12] sm:$0xff] (!%p1267_p9)   ;;  %v1614_v1 = vld [vmem:[#allocation12 + $0x8] sm:$0xff] (!%p1267_p9)   ;;  %v1615_v2 = vld [vmem:[#allocation12 + $0x10] sm:$0xff] (!%p1267_p9)  }
  0xea   : > { %364 = sbr.rel (%p1267_p9) target bundleno = 492 (0x1ec), region = 64  ;;  %1364 = vmatprep.subr.bf16.mxu0 (!%p1267_p9), %v1613_v0  ;;  %1460 = vmatprep.subr.bf16.mxu1 (!%p1267_p9), %v1613_v0  ;;  %v1616_v3 = vld [vmem:[#allocation12 + $0x18] sm:$0xff] (!%p1267_p9)   ;;  %v1621_v4 = vld [vmem:[#allocation6] sm:$0xff] (!%p1267_p9)   ;;  %v1618_v7 = vld [vmem:[#allocation12 + $0x28] sm:$0xff] (!%p1267_p9)  }
  0xeb   : > { %1365 = vmatpush3.bf16.msra.mxu0 (!%p1267_p9), %v1613_v0  ;;  %1468 = vmatpush3.bf16.msra.mxu1 (!%p1267_p9), %v1613_v0  ;;  %v1622_v5 = vld [vmem:[#allocation6 + $0x20] sm:$0xff] (!%p1267_p9)   ;;  %v1619_v8 = vld [vmem:[#allocation12 + $0x30] sm:$0xff] (!%p1267_p9)   ;;  %v1620_v9 = vld [vmem:[#allocation12 + $0x38] sm:$0xff] (!%p1267_p9)  }
  0xec   : > { %1366 = vmatprep.subr.bf16.mxu0 (!%p1267_p9), %v1614_v1  ;;  %1461 = vmatprep.subr.bf16.mxu1 (!%p1267_p9), %v1614_v1  ;;  %v1617_v6 = vld [vmem:[#allocation12 + $0x20] sm:$0xff] (!%p1267_p9)   ;;  %v1623_v10 = vld [vmem:[#allocation6 + $0x8] sm:$0xff] (!%p1267_p9)   ;;  %v1625_v12 = vld [vmem:[#allocation6 + $0x10] sm:$0xff] (!%p1267_p9)  }
  0xed   : > { %1380 = vmatprep.mubr.bf16.mxu0 (!%p1267_p9), %v1621_v4  ;;  %1388 = vmatprep.mubr.bf16.mxu1 (!%p1267_p9), %v1622_v5  ;;  %v1624_v11 = vld [vmem:[#allocation6 + $0x28] sm:$0xff] (!%p1267_p9)   ;;  %v1626_v13 = vld [vmem:[#allocation6 + $0x30] sm:$0xff] (!%p1267_p9)   ;;  %v1627_v14 = vld [vmem:[#allocation6 + $0x18] sm:$0xff] (!%p1267_p9)  }
  0xee   : > { %v1628_v15 = vld [vmem:[#allocation6 + $0x38] sm:$0xff] (!%p1267_p9)   ;;  %v1268_v16 = vld [vmem:[#allocation14] ss:$0 sm:$0xff] (!%p1267_p9) }
  0xef   : > { %1367 = vmatpush3.bf16.msra.mxu0 (!%p1267_p9), %v1614_v1  ;;  %1469 = vmatpush3.bf16.msra.mxu1 (!%p1267_p9), %v1614_v1 }
  0xf0   : > { %1368 = vmatprep.subr.bf16.mxu0 (!%p1267_p9), %v1615_v2  ;;  %1462 = vmatprep.subr.bf16.mxu1 (!%p1267_p9), %v1615_v2 }
  0xf3   : > { %1369 = vmatpush3.bf16.msra.mxu0 %v1615_v2  ;;  %1470 = vmatpush3.bf16.msra.mxu1 %v1615_v2 }
  0xf4   : > { %1370 = vmatprep.subr.bf16.mxu0 %v1616_v3  ;;  %1463 = vmatprep.subr.bf16.mxu1 %v1616_v3 }
  0xf7   : > { %1371 = vmatpush3.bf16.msra.mxu0 %v1616_v3  ;;  %1471 = vmatpush3.bf16.msra.mxu1 %v1616_v3 }
  0xf8   : > { %1372 = vmatprep.subr.bf16.mxu0 %v1617_v6  ;;  %1464 = vmatprep.subr.bf16.mxu1 %v1617_v6 }
  0xfb   : > { %1373 = vmatpush3.bf16.msra.mxu0 %v1617_v6  ;;  %1472 = vmatpush3.bf16.msra.mxu1 %v1617_v6 }
  0xfc   : > { %1374 = vmatprep.subr.bf16.mxu0 %v1618_v7  ;;  %1465 = vmatprep.subr.bf16.mxu1 %v1618_v7 }
  0xff   : > { %1375 = vmatpush3.bf16.msra.mxu0 %v1618_v7  ;;  %1473 = vmatpush3.bf16.msra.mxu1 %v1618_v7 }
 0x100   : > { %1376 = vmatprep.subr.bf16.mxu0 %v1619_v8  ;;  %1466 = vmatprep.subr.bf16.mxu1 %v1619_v8 }
 0x103   : > { %1377 = vmatpush3.bf16.msra.mxu0 %v1619_v8  ;;  %1474 = vmatpush3.bf16.msra.mxu1 %v1619_v8 }
 0x104   : > { %1378 = vmatprep.subr.bf16.mxu0 %v1620_v9  ;;  %1467 = vmatprep.subr.bf16.mxu1 %v1620_v9 }
 0x107   : > { %1379 = vmatpush3.bf16.msra.mxu0 %v1620_v9  ;;  %1475 = vmatpush3.bf16.msra.mxu1 %v1620_v9 }
 0x10a   : > { %1381 = vmatmul.mubr.bf16.vlgmr.msra.gmra.mrb[0].mxu0 %v1623_v10  ;;  %1389 = vmatmul.mubr.bf16.vlgmr.msra.gmra.mrb[0].mxu1 %v1624_v11 }
 0x10b   : > { %1384 = vmatprep.mubr.bf16.mxu0 %v1625_v12  ;;  %1392 = vmatprep.mubr.bf16.mxu1 %v1626_v13 }
 0x112   : > { %1385 = vmatmul.mubr.bf16.gmra.mrb[4].mxu0 %v1627_v14  ;;  %1393 = vmatmul.mubr.bf16.gmra.mrb[4].mxu1 %v1628_v15 }
 0x1dd   : > { %v1382_v17 = vpop.f32.mrb[0].mxu0  ;;  %v1390_v18 = vpop.f32.mrb[0].mxu1 }
 0x1de   : > { %v548_v19 = vadd.f32 %v1382_v17, %v1268_v16  ;;  %v580_v20 = vadd.f32 %v1390_v18, %v1268_v16  ;;  %v539_v21 = vpop.f32.mrb[1].mxu0  ;;  %v571_v22 = vpop.f32.mrb[1].mxu1 }
 0x1df   : > { %v540_v23 = vadd.f32 %v1268_v16, %v539_v21  ;;  %v572_v24 = vadd.f32 %v1268_v16, %v571_v22  ;;  %v1383_v25 = vpop.f32.mrb[2].mxu0  ;;  %v1391_v26 = vpop.f32.mrb[2].mxu1 }
 0x1e0   : > { %604 = vst [vmem:[#allocation15 + $0x10] sm:$0xff] %v548_v19  ;;  %612 = vst [vmem:[#allocation15 + $0x50] sm:$0xff] %v580_v20  ;;  %v551_v27 = vadd.f32 %v1383_v25, %v1268_v16  ;;  %v583_v28 = vadd.f32 %v1391_v26, %v1268_v16  ;;  %v542_v29 = vpop.f32.mrb[3].mxu0  ;;  %v574_v30 = vpop.f32.mrb[3].mxu1 }
 0x1e1   : > { %602 = vst [vmem:[#allocation15] sm:$0xff] %v540_v23  ;;  %610 = vst [vmem:[#allocation15 + $0x40] sm:$0xff] %v572_v24  ;;  %v543_v31 = vadd.f32 %v1268_v16, %v542_v29  ;;  %v575_v32 = vadd.f32 %v1268_v16, %v574_v30 }
 0x1e2   : > { %605 = vst [vmem:[#allocation15 + $0x18] sm:$0xff] %v551_v27  ;;  %613 = vst [vmem:[#allocation15 + $0x58] sm:$0xff] %v583_v28 }
 0x1e3   : > { %603 = vst [vmem:[#allocation15 + $0x8] sm:$0xff] %v543_v31  ;;  %611 = vst [vmem:[#allocation15 + $0x48] sm:$0xff] %v575_v32 }
 0x1e5   : > { %v1386_v33 = vpop.f32.mrb[4].mxu0  ;;  %v1394_v34 = vpop.f32.mrb[4].mxu1 }
 0x1e6   : > { %v564_v35 = vadd.f32 %v1386_v33, %v1268_v16  ;;  %v596_v36 = vadd.f32 %v1394_v34, %v1268_v16  ;;  %v555_v37 = vpop.f32.mrb[5].mxu0  ;;  %v587_v38 = vpop.f32.mrb[5].mxu1 }
 0x1e7   : > { %v556_v39 = vadd.f32 %v1268_v16, %v555_v37  ;;  %v588_v40 = vadd.f32 %v1268_v16, %v587_v38  ;;  %v1387_v41 = vpop.f32.mrb[6].mxu0  ;;  %v1395_v42 = vpop.f32.mrb[6].mxu1 }
 0x1e8   : > { %608 = vst [vmem:[#allocation15 + $0x30] sm:$0xff] %v564_v35  ;;  %616 = vst [vmem:[#allocation15 + $0x70] sm:$0xff] %v596_v36  ;;  %v567_v43 = vadd.f32 %v1387_v41, %v1268_v16  ;;  %v599_v44 = vadd.f32 %v1395_v42, %v1268_v16  ;;  %v558_v45 = vpop.f32.mrb[7].mxu0  ;;  %v590_v46 = vpop.f32.mrb[7].mxu1 }
 0x1e9   : > { %606 = vst [vmem:[#allocation15 + $0x20] sm:$0xff] %v556_v39  ;;  %614 = vst [vmem:[#allocation15 + $0x60] sm:$0xff] %v588_v40  ;;  %v559_v47 = vadd.f32 %v1268_v16, %v558_v45  ;;  %v591_v48 = vadd.f32 %v1268_v16, %v590_v46 }
 0x1ea   : > { %609 = vst [vmem:[#allocation15 + $0x38] sm:$0xff] %v567_v43  ;;  %617 = vst [vmem:[#allocation15 + $0x78] sm:$0xff] %v599_v44 }
 0x1eb   : > { %607 = vst [vmem:[#allocation15 + $0x28] sm:$0xff] %v559_v47  ;;  %615 = vst [vmem:[#allocation15 + $0x68] sm:$0xff] %v591_v48 }
 0x1ec PF: > { %s2499_s0 = sld [smem:[#allocation27_spill]] }
 0x1f2   : > { %s620_s25 = sld [smem:[#allocation3 + %s2499_s0]] }
 0x1f8   : > { %p1285_p3 = scmp.eq.s32.totalorder %s620_s25, 0 }
 0x1f9   : > { %v1629_v49 = vld [vmem:[#allocation6] sm:$0xff] (!%p1285_p3)   ;;  %v1630_v50 = vld [vmem:[#allocation6 + $0x8] sm:$0xff] (!%p1285_p3)   ;;  %v1631_v51 = vld [vmem:[#allocation6 + $0x10] sm:$0xff] (!%p1285_p3)  }
 0x1fa   : > { %624 = sbr.rel (%p1285_p3) target bundleno = 998 (0x3e6), region = 68  ;;  %1396 = vmatprep.subr.bf16.mxu0 (!%p1285_p3), %v1629_v49  ;;  %v1632_v52 = vld [vmem:[#allocation6 + $0x18] sm:$0xff] (!%p1285_p3)   ;;  %v1637_v53 = vld [vmem:[%s2348_s24] sm:$0xff] (!%p1285_p3)   ;;  %v1634_v55 = vld [vmem:[#allocation6 + $0x28] sm:$0xff] (!%p1285_p3)  }
 0x1fb   : > { %1397 = vmatpush3.bf16.msra.mxu0 (!%p1285_p3), %v1629_v49  ;;  %1412 = vmatprep.mubr.bf16.mxu0 (!%p1285_p3), %v1637_v53  ;;  %v1633_v54 = vld [vmem:[#allocation6 + $0x20] sm:$0xff] (!%p1285_p3)   ;;  %v1646_v57 = vld [vmem:[%s2355_s27 + $0x8] sm:$0xff] (!%p1285_p3)   ;;  %v1635_v58 = vld [vmem:[#allocation6 + $0x30] sm:$0xff] (!%p1285_p3)  }
 0x1fc   : > { %1398 = vmatprep.subr.bf16.mxu0 (!%p1285_p3), %v1630_v50  ;;  %v1645_v56 = vld [vmem:[%s2355_s27] sm:$0xff] (!%p1285_p3)   ;;  %v1647_v59 = vld [vmem:[%s2355_s27 + $0x10] sm:$0xff] (!%p1285_p3)   ;;  %v1636_v60 = vld [vmem:[#allocation6 + $0x38] sm:$0xff] (!%p1285_p3)  }
 0x1fd   : > { %1428 = vmatprep.subr.bf16.mxu1 (!%p1285_p3), %v1645_v56  ;;  %v1648_v61 = vld [vmem:[%s2355_s27 + $0x18] sm:$0xff] (!%p1285_p3)   ;;  %v1649_v62 = vld [vmem:[%s2355_s27 + $0x20] sm:$0xff] (!%p1285_p3)   ;;  %v1638_v63 = vld [vmem:[%s2348_s24 + $0x8] sm:$0xff] (!%p1285_p3)  }
 0x1fe   : > { %1429 = vmatpush3.bf16.msra.mxu1 (!%p1285_p3), %v1645_v56  ;;  %v1639_v0 = vld [vmem:[%s2348_s24 + $0x10] sm:$0xff] (!%p1285_p3)   ;;  %v1650_v1 = vld [vmem:[%s2355_s27 + $0x28] sm:$0xff] (!%p1285_p3)   ;;  %v1640_v3 = vld [vmem:[%s2348_s24 + $0x18] sm:$0xff] (!%p1285_p3)  }
 0x1ff   : > { %1399 = vmatpush3.bf16.msra.mxu0 (!%p1285_p3), %v1630_v50  ;;  %1430 = vmatprep.subr.bf16.mxu1 (!%p1285_p3), %v1646_v57  ;;  %v1651_v2 = vld [vmem:[%s2355_s27 + $0x30] sm:$0xff] (!%p1285_p3)   ;;  %v1641_v4 = vld [vmem:[%s2348_s24 + $0x20] sm:$0xff] (!%p1285_p3)   ;;  %v1642_v5 = vld [vmem:[%s2348_s24 + $0x28] sm:$0xff] (!%p1285_p3)  }
 0x200   : > { %1400 = vmatprep.subr.bf16.mxu0 (!%p1285_p3), %v1631_v51  ;;  %v1643_v6 = vld [vmem:[%s2348_s24 + $0x30] sm:$0xff] (!%p1285_p3)   ;;  %v1644_v7 = vld [vmem:[%s2348_s24 + $0x38] sm:$0xff] (!%p1285_p3)   ;;  %v850_v34 = vld [vmem:[#allocation15] sm:$0xff] (!%p1285_p3) }
 0x201   : > { %v1652_v8 = vld [vmem:[%s2355_s27 + $0x38] sm:$0xff]   ;;  %v851_v39 = vld [vmem:[#allocation15 + $0x8] sm:$0xff]  ;;  %v854_v46 = vld [vmem:[#allocation15 + $0x20] sm:$0xff] }
 0x202   : > { %1431 = vmatpush3.bf16.msra.mxu1 %v1646_v57  ;;  %v852_v33 = vld [vmem:[#allocation15 + $0x10] sm:$0xff]  ;;  %v853_v36 = vld [vmem:[#allocation15 + $0x18] sm:$0xff] }
 0x203   : > { %1401 = vmatpush3.bf16.msra.mxu0 %v1631_v51  ;;  %1432 = vmatprep.subr.bf16.mxu1 %v1647_v59  ;;  %v856_v45 = vld [vmem:[#allocation15 + $0x30] sm:$0xff]  ;;  %v857_v48 = vld [vmem:[#allocation15 + $0x38] sm:$0xff]  ;;  %v855_v51 = vld [vmem:[#allocation15 + $0x28] sm:$0xff] }
 0x204   : > { %1402 = vmatprep.subr.bf16.mxu0 %v1632_v52  ;;  %v860_v57 = vld [vmem:[#allocation15 + $0x50] sm:$0xff] }
 0x206   : > { %1433 = vmatpush3.bf16.msra.mxu1 %v1647_v59 }
 0x207   : > { %1403 = vmatpush3.bf16.msra.mxu0 %v1632_v52  ;;  %1434 = vmatprep.subr.bf16.mxu1 %v1648_v61 }
 0x208   : > { %1404 = vmatprep.subr.bf16.mxu0 %v1633_v54 }
 0x20a   : > { %1435 = vmatpush3.bf16.msra.mxu1 %v1648_v61 }
 0x20b   : > { %1405 = vmatpush3.bf16.msra.mxu0 %v1633_v54  ;;  %1436 = vmatprep.subr.bf16.mxu1 %v1649_v62 }
 0x20c   : > { %1406 = vmatprep.subr.bf16.mxu0 %v1634_v55 }
 0x20e   : > { %1437 = vmatpush3.bf16.msra.mxu1 %v1649_v62 }
 0x20f   : > { %1407 = vmatpush3.bf16.msra.mxu0 %v1634_v55  ;;  %1438 = vmatprep.subr.bf16.mxu1 %v1650_v1 }
 0x210   : > { %1408 = vmatprep.subr.bf16.mxu0 %v1635_v58 }
 0x212   : > { %1439 = vmatpush3.bf16.msra.mxu1 %v1650_v1 }
 0x213   : > { %1409 = vmatpush3.bf16.msra.mxu0 %v1635_v58  ;;  %1440 = vmatprep.subr.bf16.mxu1 %v1651_v2  ;;  %v858_v58 = vld [vmem:[#allocation15 + $0x40] sm:$0xff] }
 0x214   : > { %1410 = vmatprep.subr.bf16.mxu0 %v1636_v60 }
 0x216   : > { %1441 = vmatpush3.bf16.msra.mxu1 %v1651_v2 }
 0x217   : > { %1411 = vmatpush3.bf16.msra.mxu0 %v1636_v60  ;;  %1442 = vmatprep.subr.bf16.mxu1 %v1652_v8  ;;  %v861_v60 = vld [vmem:[#allocation15 + $0x58] sm:$0xff] }
 0x21a   : > { %1413 = vmatmul.mubr.bf16.vlgmr.msra.gmra.mrb[0].mxu0 %v1638_v63  ;;  %1443 = vmatpush3.bf16.msra.mxu1 %v1652_v8  ;;  %v859_v63 = vld [vmem:[#allocation15 + $0x48] sm:$0xff]  ;;  %v865_v8 = vld [vmem:[#allocation15 + $0x78] sm:$0xff] }
 0x21b   : > { %1416 = vmatprep.mubr.bf16.mxu0 %v1639_v0 }
 0x222   : > { %1417 = vmatmul.mubr.bf16.gmra.mrb[4].mxu0 %v1640_v3 }
 0x223   : > { %1420 = vmatprep.mubr.bf16.mxu0 %v1641_v4 }
 0x22a   : > { %1421 = vmatmul.mubr.bf16.gmra.mrb[8].mxu0 %v1642_v5  ;;  %v864_v5 = vld [vmem:[#allocation15 + $0x70] sm:$0xff] }
 0x22b   : > { %1424 = vmatprep.mubr.bf16.mxu0 %v1643_v6  ;;  %v862_v6 = vld [vmem:[#allocation15 + $0x60] sm:$0xff] }
 0x232   : > { %1425 = vmatmul.mubr.bf16.gmra.mrb[12].mxu0 %v1644_v7 }
 0x2ed   : > { %v1414_v9 = vpop.f32.mrb[0].mxu0 }
 0x2ee   : > { %v787_v10 = vpop.f32.mrb[1].mxu0 }
 0x2ef   : > { %v1415_v11 = vpop.f32.mrb[2].mxu0 }
 0x2f0   : > { %v867_v12 = vpack.c.bf16 %v1415_v11, %v1414_v9  ;;  %v790_v13 = vpop.f32.mrb[3].mxu0  ;;  %v863_v11 = vld [vmem:[#allocation15 + $0x68] sm:$0xff] }
 0x2f1   : > { %v866_v14 = vpack.c.bf16 %v790_v13, %v787_v10 }
 0x2f3   : > { %1444 = vmatprep.mubr.bf16.mxu1 %v866_v14 }
 0x2f4   : > { %1445 = vmatmul.mubr.bf16.vlgmr.msra.gmra.mrb[0].mxu1 %v867_v12 }
 0x2f5   : > { %v1418_v15 = vpop.f32.mrb[4].mxu0 }
 0x2f6   : > { %v803_v16 = vpop.f32.mrb[5].mxu0 }
 0x2f7   : > { %v1419_v17 = vpop.f32.mrb[6].mxu0 }
 0x2f8   : > { %v869_v18 = vpack.c.bf16 %v1419_v17, %v1418_v15  ;;  %v806_v19 = vpop.f32.mrb[7].mxu0 }
 0x2f9   : > { %v868_v20 = vpack.c.bf16 %v806_v19, %v803_v16 }
 0x2fb   : > { %1448 = vmatprep.mubr.bf16.mxu1 %v868_v20 }
 0x2fc   : > { %1449 = vmatmul.mubr.bf16.gmra.mrb[4].mxu1 %v869_v18 }
 0x2fd   : > { %v1422_v21 = vpop.f32.mrb[8].mxu0 }
 0x2fe   : > { %v819_v22 = vpop.f32.mrb[9].mxu0 }
 0x2ff   : > { %v1423_v23 = vpop.f32.mrb[10].mxu0 }
 0x300   : > { %v871_v24 = vpack.c.bf16 %v1423_v23, %v1422_v21  ;;  %v822_v25 = vpop.f32.mrb[11].mxu0 }
 0x301   : > { %v870_v26 = vpack.c.bf16 %v822_v25, %v819_v22 }
 0x303   : > { %1452 = vmatprep.mubr.bf16.mxu1 %v870_v26 }
 0x304   : > { %1453 = vmatmul.mubr.bf16.gmra.mrb[8].mxu1 %v871_v24 }
 0x305   : > { %v1426_v27 = vpop.f32.mrb[12].mxu0 }
 0x306   : > { %v835_v28 = vpop.f32.mrb[13].mxu0 }
 0x307   : > { %v1427_v29 = vpop.f32.mrb[14].mxu0 }
 0x308   : > { %v873_v30 = vpack.c.bf16 %v1427_v29, %v1426_v27  ;;  %v838_v31 = vpop.f32.mrb[15].mxu0 }
 0x309   : > { %v872_v32 = vpack.c.bf16 %v838_v31, %v835_v28 }
 0x30b   : > { %1456 = vmatprep.mubr.bf16.mxu1 %v872_v32 }
 0x30c   : > { %1457 = vmatmul.mubr.bf16.gmra.mrb[12].mxu1 %v873_v30 }
 0x3c7   : > { %v1446_v35 = vpop.f32.mrb[0].mxu1 }
 0x3c8   : > { %v1037_v37 = vadd.f32 %v1446_v35, %v852_v33  ;;  %v972_v38 = vpop.f32.mrb[1].mxu1 }
 0x3c9   : > { %v1035_v40 = vadd.f32 %v972_v38, %v850_v34  ;;  %v1447_v41 = vpop.f32.mrb[2].mxu1 }
 0x3ca   : > { %1053 = vst [vmem:[#allocation15 + $0x10] sm:$0xff] %v1037_v37  ;;  %v1038_v42 = vadd.f32 %v1447_v41, %v853_v36  ;;  %v975_v43 = vpop.f32.mrb[3].mxu1 }
 0x3cb   : > { %1051 = vst [vmem:[#allocation15] sm:$0xff] %v1035_v40  ;;  %v1036_v44 = vadd.f32 %v975_v43, %v851_v39 }
 0x3cc   : > { %1054 = vst [vmem:[#allocation15 + $0x18] sm:$0xff] %v1038_v42 }
 0x3cd   : > { %1052 = vst [vmem:[#allocation15 + $0x8] sm:$0xff] %v1036_v44 }
 0x3cf   : > { %v1450_v47 = vpop.f32.mrb[4].mxu1 }
 0x3d0   : > { %v1041_v49 = vadd.f32 %v1450_v47, %v856_v45  ;;  %v988_v50 = vpop.f32.mrb[5].mxu1 }
 0x3d1   : > { %v1039_v52 = vadd.f32 %v988_v50, %v854_v46  ;;  %v1451_v53 = vpop.f32.mrb[6].mxu1 }
 0x3d2   : > { %1057 = vst [vmem:[#allocation15 + $0x30] sm:$0xff] %v1041_v49  ;;  %v1042_v54 = vadd.f32 %v1451_v53, %v857_v48  ;;  %v991_v55 = vpop.f32.mrb[7].mxu1 }
 0x3d3   : > { %1055 = vst [vmem:[#allocation15 + $0x20] sm:$0xff] %v1039_v52  ;;  %v1040_v56 = vadd.f32 %v991_v55, %v855_v51 }
 0x3d4   : > { %1058 = vst [vmem:[#allocation15 + $0x38] sm:$0xff] %v1042_v54 }
 0x3d5   : > { %1056 = vst [vmem:[#allocation15 + $0x28] sm:$0xff] %v1040_v56 }
 0x3d7   : > { %v1454_v59 = vpop.f32.mrb[8].mxu1 }
 0x3d8   : > { %v1045_v61 = vadd.f32 %v1454_v59, %v860_v57  ;;  %v1004_v62 = vpop.f32.mrb[9].mxu1 }
 0x3d9   : > { %v1043_v0 = vadd.f32 %v1004_v62, %v858_v58  ;;  %v1455_v1 = vpop.f32.mrb[10].mxu1 }
 0x3da   : > { %1061 = vst [vmem:[#allocation15 + $0x50] sm:$0xff] %v1045_v61  ;;  %v1046_v2 = vadd.f32 %v1455_v1, %v861_v60  ;;  %v1007_v3 = vpop.f32.mrb[11].mxu1 }
 0x3db   : > { %1059 = vst [vmem:[#allocation15 + $0x40] sm:$0xff] %v1043_v0  ;;  %v1044_v4 = vadd.f32 %v1007_v3, %v859_v63 }
 0x3dc   : > { %1062 = vst [vmem:[#allocation15 + $0x58] sm:$0xff] %v1046_v2 }
 0x3dd   : > { %1060 = vst [vmem:[#allocation15 + $0x48] sm:$0xff] %v1044_v4 }
 0x3df   : > { %v1458_v7 = vpop.f32.mrb[12].mxu1 }
 0x3e0   : > { %v1049_v9 = vadd.f32 %v1458_v7, %v864_v5  ;;  %v1020_v10 = vpop.f32.mrb[13].mxu1 }
 0x3e1   : > { %v1047_v12 = vadd.f32 %v1020_v10, %v862_v6  ;;  %v1459_v13 = vpop.f32.mrb[14].mxu1 }
 0x3e2   : > { %1065 = vst [vmem:[#allocation15 + $0x70] sm:$0xff] %v1049_v9  ;;  %v1050_v14 = vadd.f32 %v1459_v13, %v865_v8  ;;  %v1023_v15 = vpop.f32.mrb[15].mxu1 }
 0x3e3   : > { %1063 = vst [vmem:[#allocation15 + $0x60] sm:$0xff] %v1047_v12  ;;  %v1048_v16 = vadd.f32 %v1023_v15, %v863_v11 }
 0x3e4   : > { %1066 = vst [vmem:[#allocation15 + $0x78] sm:$0xff] %v1050_v14 }
 0x3e5   : > { %1064 = vst [vmem:[#allocation15 + $0x68] sm:$0xff] %v1048_v16 }
 0x3e6 PF: > { %s2500_s29 = sld [smem:[#allocation27_spill]] }
 0x3ec   : > { %p1310_p5 = scmp.ne.s32.totalorder %s2500_s29, 5 }
 0x3ed   : > { %v1071_v17 = vld [vmem:[#allocation15] sm:$0xff] (!%p1310_p5)  ;;  %v1072_v18 = vld [vmem:[#allocation15 + $0x8] sm:$0xff] (!%p1310_p5)  ;;  %v1073_v19 = vld [vmem:[#allocation15 + $0x10] sm:$0xff] (!%p1310_p5) }
 0x3ee   : > { %1070 = sbr.rel (%p1310_p5) target bundleno = 1017 (0x3f9), region = 72  ;;  %v1087_v20 = vmax.f32 (!%p1310_p5), %v1071_v17, 0.0  ;;  %v1088_v21 = vmax.f32 (!%p1310_p5), %v1072_v18, 0.0  ;;  %v1089_v22 = vmax.f32 (!%p1310_p5), %v1073_v19, 0.0  ;;  %v1074_v23 = vld [vmem:[#allocation15 + $0x18] sm:$0xff] (!%p1310_p5)  ;;  %v1075_v24 = vld [vmem:[#allocation15 + $0x20] sm:$0xff] (!%p1310_p5) }
 0x3ef   : > { %v1076_v25 = vld [vmem:[#allocation15 + $0x28] sm:$0xff] (!%p1310_p5)  ;;  %v1090_v26 = vmax.f32 (!%p1310_p5), %v1074_v23, 0.0  ;;  %v1091_v27 = vmax.f32 (!%p1310_p5), %v1075_v24, 0.0  ;;  %v1077_v29 = vld [vmem:[#allocation15 + $0x30] sm:$0xff] (!%p1310_p5)  ;;  %v1078_v30 = vld [vmem:[#allocation15 + $0x38] sm:$0xff] (!%p1310_p5) }
 0x3f0   : > { %v1092_v28 = vmax.f32 (!%p1310_p5), %v1076_v25, 0.0  ;;  %v1079_v31 = vld [vmem:[#allocation15 + $0x40] sm:$0xff] (!%p1310_p5)  ;;  %1103 = vst [vmem:[#allocation15] sm:$0xff] (!%p1310_p5), %v1087_v20  ;;  %1104 = vst [vmem:[#allocation15 + $0x8] sm:$0xff] (!%p1310_p5), %v1088_v21  ;;  %v1093_v32 = vmax.f32 (!%p1310_p5), %v1077_v29, 0.0  ;;  %v1094_v33 = vmax.f32 (!%p1310_p5), %v1078_v30, 0.0 }
 0x3f1   : > { %1105 = vst [vmem:[#allocation15 + $0x10] sm:$0xff] (!%p1310_p5), %v1089_v22  ;;  %v1095_v34 = vmax.f32 (!%p1310_p5), %v1079_v31, 0.0  ;;  %v1080_v35 = vld [vmem:[#allocation15 + $0x48] sm:$0xff] (!%p1310_p5)  ;;  %v1081_v36 = vld [vmem:[#allocation15 + $0x50] sm:$0xff] (!%p1310_p5)  ;;  %v1082_v37 = vld [vmem:[#allocation15 + $0x58] sm:$0xff] (!%p1310_p5) }
 0x3f2   : > { %1106 = vst [vmem:[#allocation15 + $0x18] sm:$0xff] (!%p1310_p5), %v1090_v26  ;;  %1107 = vst [vmem:[#allocation15 + $0x20] sm:$0xff] (!%p1310_p5), %v1091_v27  ;;  %v1096_v38 = vmax.f32 (!%p1310_p5), %v1080_v35, 0.0  ;;  %v1097_v39 = vmax.f32 (!%p1310_p5), %v1081_v36, 0.0  ;;  %v1098_v40 = vmax.f32 (!%p1310_p5), %v1082_v37, 0.0  ;;  %v1083_v41 = vld [vmem:[#allocation15 + $0x60] sm:$0xff] (!%p1310_p5) }
 0x3f3   : > { %1108 = vst [vmem:[#allocation15 + $0x28] sm:$0xff] (!%p1310_p5), %v1092_v28  ;;  %v1084_v42 = vld [vmem:[#allocation15 + $0x68] sm:$0xff] (!%p1310_p5)  ;;  %v1085_v43 = vld [vmem:[#allocation15 + $0x70] sm:$0xff] (!%p1310_p5)  ;;  %1109 = vst [vmem:[#allocation15 + $0x30] sm:$0xff] (!%p1310_p5), %v1093_v32  ;;  %v1099_v44 = vmax.f32 (!%p1310_p5), %v1083_v41, 0.0 }
 0x3f4   : > { %1110 = vst [vmem:[#allocation15 + $0x38] sm:$0xff] (!%p1310_p5), %v1094_v33  ;;  %1111 = vst [vmem:[#allocation15 + $0x40] sm:$0xff] (!%p1310_p5), %v1095_v34  ;;  %v1100_v45 = vmax.f32 (!%p1310_p5), %v1084_v42, 0.0  ;;  %v1101_v46 = vmax.f32 (!%p1310_p5), %v1085_v43, 0.0  ;;  %v1086_v47 = vld [vmem:[#allocation15 + $0x78] sm:$0xff] (!%p1310_p5) }
 0x3f5   : > { %1112 = vst [vmem:[#allocation15 + $0x48] sm:$0xff] %v1096_v38  ;;  %1113 = vst [vmem:[#allocation15 + $0x50] sm:$0xff] %v1097_v39  ;;  %v1102_v48 = vmax.f32 %v1086_v47, 0.0 }
 0x3f6   : > { %1114 = vst [vmem:[#allocation15 + $0x58] sm:$0xff] %v1098_v40  ;;  %1115 = vst [vmem:[#allocation15 + $0x60] sm:$0xff] %v1099_v44 }
 0x3f7   : > { %1116 = vst [vmem:[#allocation15 + $0x68] sm:$0xff] %v1100_v45  ;;  %1117 = vst [vmem:[#allocation15 + $0x70] sm:$0xff] %v1101_v46 }
 0x3f8   : > { %1118 = vst [vmem:[#allocation15 + $0x78] sm:$0xff] %v1102_v48 }
 0x3f9 PF: > { %s2501_s19 = sld [smem:[#allocation28_spill]]  ;;  %s1957_s6 = smov [#allocation15]  }
 0x3fa   : > { %s1128_s28 = sshll.u32 %s1957_s6, 4  ;;  %s1129_s28 = int_to_ptr.vmem [resolvable:$true] %s1128_s28 }
 0x3fb   : > { %s1827_s9 = scalar_lea.vmem %s1129_s28, 2048  ;;  %p1834_p0 = scmp.lt.s32.totalorder %s1129_s28, %s1129_s28 }
 0x3fc   : > { %p1828_p2 = scmp.ne.s32.totalorder %s1129_s28, %s1827_s9  ;;  %p1835_p8 = scmp.lt.s32.totalorder %s1827_s9, %s1827_s9 }
 0x3fe   : > { %p1836_p11 = por %p1835_p8, %p1834_p0 }
 0x3ff   : > { %p1528_p6 = scmp.eq.s32.totalorder %s2501_s19, 5 }
 0x401   : > { %p1829_p4 = pnand %p1828_p2, %p1528_p6 }
 0x403   : > { %p1830_p7 = pneg %p1829_p4 }
 0x405   : > { %p1837_p12 = pnand %p1836_p11, %p1830_p7 }
 0x407   : > { %1840 = shalt.err (!%p1837_p12)
}
 0x408   : > { %s2502_s2 = sld [smem:[#allocation32_spill]] }
 0x40e   : > { %s2503_s11 = smov %s2502_s2  ;;  %s1841_s14 = scalar_lea.hbm %s2502_s2, 2048 }
 0x40f   : > { %p1842_p10 = scmp.ne.s32.totalorder %s2503_s11, %s1841_s14  ;;  %p1847_p9 = scmp.lt.u32.totalorder %s1841_s14, %s2503_s11 }
 0x411   : > { %p1843_p13 = pnand %p1842_p10, %p1528_p6 }
 0x413   : > { %p1844_p1 = pneg %p1843_p13 }
 0x415   : > { %p1849_p3 = pnand %p1847_p9, %p1844_p1 }
 0x417   : > { %1852 = shalt.err (!%p1849_p3)
}
 0x418   : > { %s1958_s21 = smov 128   ;;  %s1959_s27 = smov 8  }
 0x419   : > { %1497 = dma.vmem_to_hbm [thread:$0]  (%p1528_p6), %s1129_s28, 2048, %s2503_s11, [#allocation8], %s1958_s21, %s1958_s21, %s1959_s27  }
 0x41a   : > { %1908 = dma.done.wait (%p1528_p6), [#allocation8], 2048  }
 0x41b   : > { %1910 = vsyncadd (%p1528_p6), [#allocation8], 4294965248 }
 0x41c PF: > { %s32_s18 = sadd.s32 1, %s1945_s18   ;;  %s2504_s25 = smov %s2292_s1 }
 0x41d   : > { %p29_p5 = scmp.ge.s32.totalorder %s32_s18, 8   ;;  %s2505_s14 = sld [smem:[#allocation26_spill]] }
 0x41e   : > { %s2506_s1 = smov %s1917_s12  ;;  %s2507_s12 = smov %s1921_s13 }
 0x41f   : > { %s2508_s13 = smov %s2504_s25  ;;  %s2509_s15 = smov %s1933_s16 }
 0x420   : > { %s2510_s16 = smov %s2177_s23  ;;  %s2511_s2 = smov %s1941_s17 }
 0x421   : > { %s2512_s17 = smov %s2514_s26  ;;  %31 = sbr.rel (!%p29_p5) target bundleno = 36 (0x24), region = 115 }
 0x428   :  { %1144 = vsyncpa [#allocation7], 1 }
 0x429   :  { %1146 = vsyncpa [#allocation7 + $0x1], 1 }
 0x42a   :  { %1147 = vsyncpa [#allocation10], 1 }
 0x42b   :  { %1149 = vsyncpa [#allocation10 + $0x1], 1 }
 0x42c   :  { %1150 = vsyncpa [#allocation13], 1 }
 0x42d   :  { %1151 = vsyncpa [#allocation8], 1 }
 0x42e   :  { %1153 = vsyncpa [#allocation8 + $0x1], 1 }

</bundles_post_ra>
